<compile_context>
chip_gen: v6e
topology: v6e:2x2x1
jax: 0.10.0
libtpu: 0.0.40
codegen_flags: <defaults>
</compile_context>

<pallas_src>
import jax
import jax.numpy as jnp
import numpy as np
from jax.experimental import pallas as pl
from jax.experimental.pallas import tpu as pltpu


def _global_pooling_bias_kernel(scale_ref, shift_ref, wt_ref, fcb_ref,
                                g_ref, x_ref, xo_ref, po_ref):
    # Cast to f32 in-register right after load (keeps HBM traffic in the
    # native dtype; keeps elementwise/EUP path on f32 for v5e).
    g = g_ref[...].astype(jnp.float32)                       # (TB, Cg, HW)
    scale = scale_ref[...][None]                             # (1, Cg, 1)
    shift = shift_ref[...][None]                             # (1, Cg, 1)
    gp = jnp.maximum(g * scale + shift, 0.0)                 # BN(eval) + ReLU

    hw = gp.shape[-1]
    # Single-pass fused reductions: sum, sum-of-squares, max.
    s = jnp.sum(gp, axis=-1)                                 # (TB, Cg)
    ss = jnp.sum(gp * gp, axis=-1)                           # (TB, Cg)
    mx = jnp.max(gp, axis=-1)                                # (TB, Cg)
    mean = s * (1.0 / hw)
    # torch.std default is unbiased (divide by N-1); NaN when H*W == 1, same as torch.
    inv_nm1 = (1.0 / (hw - 1)) if hw > 1 else float("nan")
    var = jnp.maximum(ss - s * mean, 0.0) * inv_nm1
    std = jnp.sqrt(var)

    # Lane-dense pooled block: (TB, 3*Cg) with concat along the lane axis.
    pooled = jnp.concatenate([mean, mx, std], axis=-1)       # (TB, 3*Cg)
    po_ref[...] = pooled.astype(po_ref.dtype)

    # channel_biases = fc_bias(g_pooled): batched (TB,3Cg)x(3Cg,Cx) dot.
    bias = jnp.dot(pooled, wt_ref[...],
                   preferred_element_type=jnp.float32) + fcb_ref[...]   # (TB, Cx)

    x = x_ref[...].astype(jnp.float32)                       # (TB, Cx, HW)
    xo_ref[...] = (x + bias[:, :, None]).astype(xo_ref.dtype)


def _pick_tb(batch, c_x, c_g, hw, itemsize, budget_bytes=24 * 1024 * 1024):
    """Largest per-step batch tile whose double-buffered x-in/x-out/g-in blocks
    fit a VMEM budget that is safe on v7x (64 MiB) as well as v5e/v6e (128 MiB)."""
    per_batch = (2 * c_x + c_g) * hw * itemsize     # x in + x_biased out + g in
    tb = max(1, budget_bytes // (2 * per_batch))    # 2x: double-buffered pipeline
    if tb >= batch:
        return batch                                # single step: block == full dim
    # Multi-step: keep the (tb, 3*Cg) pooled-output block sublane-aligned (mult of 8).
    return max(8, (tb // 8) * 8)


def global_pooling_bias(x, g, bn_gamma, bn_beta, bn_mean, bn_var,
                        fc_w, fc_b, *, eps=1e-5, tb=None, donate_x=False):
    """x: (B, Cx, H, W), g: (B, Cg, H, W)  ->  (x_biased, g_pooled).

    donate_x=True aliases x's (reshaped/padded) buffer to x_biased; only use it
    if the caller no longer needs x.
    """
    B, Cx, H, W = x.shape
    _, Cg, _, _ = g.shape
    HW = H * W

    # Keep the native HBM dtype — no f32 up-cast pre-pass. Cast happens in-kernel.
    x2 = x.reshape(B, Cx, HW)
    g2 = g.reshape(B, Cg, HW)

    itemsize = max(x.dtype.itemsize, g.dtype.itemsize)
    if tb is None:
        tb = _pick_tb(B, Cx, Cg, HW, itemsize)
    tb = int(min(tb, B))
    if tb < B:
        tb = max(8, (tb // 8) * 8)
    n_steps = -(-B // tb)
    B_pad = n_steps * tb
    if B_pad != B:
        pad = B_pad - B
        x2 = jnp.pad(x2, ((0, pad), (0, 0), (0, 0)))
        g2 = jnp.pad(g2, ((0, pad), (0, 0), (0, 0)))

    # Fold eval-mode BatchNorm into per-channel scale/shift (glue, tiny).
    inv = bn_gamma.astype(jnp.float32) / jnp.sqrt(bn_var.astype(jnp.float32) + eps)
    scale = inv.reshape(Cg, 1)
    shift = (bn_beta.astype(jnp.float32)
             - bn_mean.astype(jnp.float32) * inv).reshape(Cg, 1)
    fcw_t = fc_w.astype(jnp.float32).T                       # (3*Cg, Cx)
    fcb = fc_b.astype(jnp.float32).reshape(1, Cx)

    out_shapes = (
        jax.ShapeDtypeStruct((B_pad, Cx, HW), x.dtype),      # x_biased (flattened)
        jax.ShapeDtypeStruct((B_pad, 3 * Cg), jnp.float32),  # g_pooled (lane-dense)
    )

    grid_spec = pltpu.PrefetchScalarGridSpec(
        num_scalar_prefetch=0,
        grid=(n_steps,),
        in_specs=[
            pl.BlockSpec((Cg, 1), lambda b: (0, 0)),           # bn scale
            pl.BlockSpec((Cg, 1), lambda b: (0, 0)),           # bn shift
            pl.BlockSpec((3 * Cg, Cx), lambda b: (0, 0)),      # fc weight (transposed)
            pl.BlockSpec((1, Cx), lambda b: (0, 0)),           # fc bias
            pl.BlockSpec((tb, Cg, HW), lambda b: (b, 0, 0)),   # g
            pl.BlockSpec((tb, Cx, HW), lambda b: (b, 0, 0)),   # x
        ],
        out_specs=[
            pl.BlockSpec((tb, Cx, HW), lambda b: (b, 0, 0)),   # x_biased
            pl.BlockSpec((tb, 3 * Cg), lambda b: (b, 0)),      # g_pooled
        ],
    )

    # Mem-bound op: tell XLA so it schedules neighbours sensibly.
    bytes_io = (2 * x2.size * x2.dtype.itemsize               # x in + x_biased out
                + g2.size * g2.dtype.itemsize                 # g in
                + B_pad * 3 * Cg * 4)                         # g_pooled out
    cost = pl.CostEstimate(
        flops=int(6 * B_pad * Cg * HW + B_pad * Cx * HW + 2 * B_pad * 3 * Cg * Cx),
        transcendentals=int(B_pad * Cg),
        bytes_accessed=int(bytes_io),
    )

    # Double-buffered working set for the big per-step blocks; limit kept
    # v7x-safe (<= ~48 MiB) unless a huge spatial size forces it higher.
    work_bytes = 2 * tb * (2 * Cx + Cg) * HW * itemsize
    vmem_limit = int(max(48 * 1024 * 1024, (work_bytes * 3) // 2))

    x_biased2, pooled = pl.pallas_call(
        _global_pooling_bias_kernel,
        out_shape=out_shapes,
        grid_spec=grid_spec,
        compiler_params=pltpu.CompilerParams(
            dimension_semantics=("parallel",),
            vmem_limit_bytes=vmem_limit),
        cost_estimate=cost,
        input_output_aliases=({5: 0} if donate_x else {}),
    )(scale, shift, fcw_t, fcb, g2, x2)

    return x_biased2[:B].reshape(B, Cx, H, W), pooled[:B]


if __name__ == "__main__":
    eps = 1e-5

    def reference(x, g, bn_gamma, bn_beta, bn_mean, bn_var, fc_w, fc_b):
        gp = jax.nn.relu((x_ := g - bn_mean[None, :, None, None])
                         / jnp.sqrt(bn_var[None, :, None, None] + eps)
                         * bn_gamma[None, :, None, None]
                         + bn_beta[None, :, None, None])
        g_mean = gp.mean(axis=(2, 3))
        g_max = gp.max(axis=(2, 3))
        g_std = jnp.std(gp, axis=(2, 3), ddof=1)
        g_pooled = jnp.concatenate([g_mean, g_max, g_std], axis=1)
        bias = g_pooled @ fc_w.T + fc_b
        return x + bias[:, :, None, None], g_pooled

    def make_inputs(key, B, Cg, Cx, H, W):
        ks = jax.random.split(key, 8)
        x = jax.random.normal(ks[0], (B, Cx, H, W), jnp.float32)
        g = jax.random.normal(ks[1], (B, Cg, H, W), jnp.float32)
        bn_gamma = 1.0 + 0.1 * jax.random.normal(ks[2], (Cg,), jnp.float32)
        bn_beta = 0.1 * jax.random.normal(ks[3], (Cg,), jnp.float32)
        bn_mean = 0.1 * jax.random.normal(ks[4], (Cg,), jnp.float32)
        bn_var = jnp.abs(1.0 + 0.1 * jax.random.normal(ks[5], (Cg,), jnp.float32))
        lim = 1.0 / np.sqrt(3 * Cg)
        fc_w = jax.random.uniform(ks[6], (Cx, 3 * Cg), jnp.float32, -lim, lim)
        fc_b = jax.random.uniform(ks[7], (Cx,), jnp.float32, -lim, lim)
        return x, g, bn_gamma, bn_beta, bn_mean, bn_var, fc_w, fc_b

    # --- Test 1: small single-step case, f32 ---
    args = make_inputs(jax.random.PRNGKey(0), B=2, Cg=4, Cx=8, H=16, W=16)
    xb_ref, gp_ref = reference(*args)
    xb, gp = global_pooling_bias(*args, eps=eps)
    jax.block_until_ready((xb, gp))
    np.testing.assert_allclose(np.asarray(gp), np.asarray(gp_ref), rtol=1e-5, atol=2e-5)
    np.testing.assert_allclose(np.asarray(xb), np.asarray(xb_ref), rtol=1e-5, atol=2e-5)

    # --- Test 2: multi-step grid + batch padding + donated x (B=10, tb=8) ---
    args2 = make_inputs(jax.random.PRNGKey(1), B=10, Cg=4, Cx=8, H=16, W=16)
    xb2_ref, gp2_ref = reference(*args2)
    xb2, gp2 = global_pooling_bias(*args2, eps=eps, tb=8, donate_x=True)
    jax.block_until_ready((xb2, gp2))
    np.testing.assert_allclose(np.asarray(gp2), np.asarray(gp2_ref), rtol=1e-5, atol=2e-5)
    np.testing.assert_allclose(np.asarray(xb2), np.asarray(xb2_ref), rtol=1e-5, atol=2e-5)

    # --- Test 3: bf16 activations stay bf16 in HBM; f32 compute in-kernel ---
    x0, g0, *params = args
    xb3, gp3 = global_pooling_bias(x0.astype(jnp.bfloat16), g0.astype(jnp.bfloat16),
                                   *params, eps=eps)
    jax.block_until_ready((xb3, gp3))
    np.testing.assert_allclose(np.asarray(gp3), np.asarray(gp_ref), rtol=2e-2, atol=2e-2)
    np.testing.assert_allclose(np.asarray(xb3.astype(jnp.float32)), np.asarray(xb_ref),
                               rtol=2e-2, atol=2e-2)

    print("KERNEL_OK")
</pallas_src>

<mosaic_0001>
module attributes {stable_mosaic.version = 11 : i64} {
  func.func @_global_pooling_bias_kernel(%arg0: i32, %arg1: memref<4x1xf32, #tpu.memory_space<vmem>>, %arg2: memref<4x1xf32, #tpu.memory_space<vmem>>, %arg3: memref<12x8xf32, #tpu.memory_space<vmem>>, %arg4: memref<1x8xf32, #tpu.memory_space<vmem>>, %arg5: memref<2x4x256xf32, #tpu.memory_space<vmem>>, %arg6: memref<2x8x256xf32, #tpu.memory_space<vmem>>, %arg7: memref<2x8x256xf32, #tpu.memory_space<vmem>>, %arg8: memref<2x12xf32, #tpu.memory_space<vmem>>) attributes {dimension_semantics = [#tpu.dimension_semantics<parallel>], iteration_bounds = array<i64: 1>, scalar_prefetch = 0 : i64, scratch_operands = 0 : i64, tpu.core_type = #tpu.core_type<tc>, window_params = [{pipeline_mode = #tpu.pipeline_mode<synchronous>, transform_indices = @transform_0, window_bounds = array<i64: 4, 1>}, {pipeline_mode = #tpu.pipeline_mode<synchronous>, transform_indices = @transform_1, window_bounds = array<i64: 4, 1>}, {pipeline_mode = #tpu.pipeline_mode<synchronous>, transform_indices = @transform_2, window_bounds = array<i64: 12, 8>}, {pipeline_mode = #tpu.pipeline_mode<synchronous>, transform_indices = @transform_3, window_bounds = array<i64: 1, 8>}, {transform_indices = @transform_4, window_bounds = array<i64: 2, 4, 256>}, {transform_indices = @transform_5, window_bounds = array<i64: 2, 8, 256>}, {transform_indices = @transform_6, window_bounds = array<i64: 2, 8, 256>}, {transform_indices = @transform_7, window_bounds = array<i64: 2, 12>}]} {
    %c0 = arith.constant 0 : index
    %c0_0 = arith.constant 0 : index
    %c0_1 = arith.constant 0 : index
    %0 = vector.load %arg5[%c0, %c0_0, %c0_1] : memref<2x4x256xf32, #tpu.memory_space<vmem>>, vector<2x4x256xf32>
    %c0_2 = arith.constant 0 : index
    %c0_3 = arith.constant 0 : index
    %1 = vector.load %arg1[%c0_2, %c0_3] : memref<4x1xf32, #tpu.memory_space<vmem>>, vector<4x1xf32>
    %2 = vector.shape_cast %1 : vector<4x1xf32> to vector<1x4x1xf32>
    %c0_4 = arith.constant 0 : index
    %c0_5 = arith.constant 0 : index
    %3 = vector.load %arg2[%c0_4, %c0_5] : memref<4x1xf32, #tpu.memory_space<vmem>>, vector<4x1xf32>
    %4 = vector.shape_cast %3 : vector<4x1xf32> to vector<1x4x1xf32>
    %5 = vector.broadcast %2 : vector<1x4x1xf32> to vector<2x4x256xf32>
    %6 = arith.mulf %0, %5 : vector<2x4x256xf32>
    %7 = vector.broadcast %4 : vector<1x4x1xf32> to vector<2x4x256xf32>
    %8 = arith.addf %6, %7 : vector<2x4x256xf32>
    %cst = arith.constant 0.000000e+00 : f32
    %9 = vector.broadcast %cst : f32 to vector<2x4x256xf32>
    %10 = arith.maximumf %8, %9 : vector<2x4x256xf32>
    %cst_6 = arith.constant dense<0.000000e+00> : vector<2x4xf32>
    %11 = vector.multi_reduction <add>, %10, %cst_6 [2] : vector<2x4x256xf32> to vector<2x4xf32>
    %12 = arith.mulf %10, %10 : vector<2x4x256xf32>
    %cst_7 = arith.constant dense<0.000000e+00> : vector<2x4xf32>
    %13 = vector.multi_reduction <add>, %12, %cst_7 [2] : vector<2x4x256xf32> to vector<2x4xf32>
    %cst_8 = arith.constant dense<0xFF800000> : vector<2x4xf32>
    %14 = vector.multi_reduction <maximumf>, %10, %cst_8 [2] : vector<2x4x256xf32> to vector<2x4xf32>
    %cst_9 = arith.constant 3.906250e-03 : f32
    %15 = vector.broadcast %cst_9 : f32 to vector<2x4xf32>
    %16 = arith.mulf %11, %15 : vector<2x4xf32>
    %17 = arith.mulf %11, %16 : vector<2x4xf32>
    %18 = arith.subf %13, %17 : vector<2x4xf32>
    %cst_10 = arith.constant 0.000000e+00 : f32
    %19 = vector.broadcast %cst_10 : f32 to vector<2x4xf32>
    %20 = arith.maximumf %18, %19 : vector<2x4xf32>
    %cst_11 = arith.constant 0.00392156886 : f32
    %21 = vector.broadcast %cst_11 : f32 to vector<2x4xf32>
    %22 = arith.mulf %20, %21 : vector<2x4xf32>
    %23 = math.sqrt %22 : vector<2x4xf32>
    %24 = tpu.concatenate %16, %14, %23 in 1 : vector<2x4xf32>, vector<2x4xf32>, vector<2x4xf32> -> vector<2x12xf32>
    %c0_12 = arith.constant 0 : index
    %c0_13 = arith.constant 0 : index
    %25 = vector.load %arg8[%c0_12, %c0_13] : memref<2x12xf32, #tpu.memory_space<vmem>>, vector<2x12xf32>
    tpu.vector_store %arg8[%c0_12, %c0_13], %24 {strides = array<i32>} : memref<2x12xf32, #tpu.memory_space<vmem>>, vector<2x12xf32>,
    %c0_14 = arith.constant 0 : index
    %c0_15 = arith.constant 0 : index
    %26 = vector.load %arg3[%c0_14, %c0_15] : memref<12x8xf32, #tpu.memory_space<vmem>>, vector<12x8xf32>
    %cst_16 = arith.constant dense<0.000000e+00> : vector<2x8xf32>
    %27 = tpu.matmul %24, %26, %cst_16 {dimension_numbers = #tpu.dot_dimension_numbers<[1], [0], [0], [1], [0, 0, 1, 1], [], []>} : vector<2x12xf32>, vector<12x8xf32>, vector<2x8xf32> -> vector<2x8xf32>
    %c0_17 = arith.constant 0 : index
    %c0_18 = arith.constant 0 : index
    %28 = vector.load %arg4[%c0_17, %c0_18] : memref<1x8xf32, #tpu.memory_space<vmem>>, vector<1x8xf32>
    %29 = vector.broadcast %28 : vector<1x8xf32> to vector<2x8xf32>
    %30 = arith.addf %27, %29 : vector<2x8xf32>
    %c0_19 = arith.constant 0 : index
    %c0_20 = arith.constant 0 : index
    %c0_21 = arith.constant 0 : index
    %31 = vector.load %arg6[%c0_19, %c0_20, %c0_21] : memref<2x8x256xf32, #tpu.memory_space<vmem>>, vector<2x8x256xf32>
    %32 = vector.shape_cast %30 : vector<2x8xf32> to vector<2x8x1xf32>
    %33 = vector.broadcast %32 : vector<2x8x1xf32> to vector<2x8x256xf32>
    %34 = arith.addf %31, %33 : vector<2x8x256xf32>
    %c0_22 = arith.constant 0 : index
    %c0_23 = arith.constant 0 : index
    %c0_24 = arith.constant 0 : index
    %35 = vector.load %arg7[%c0_22, %c0_23, %c0_24] : memref<2x8x256xf32, #tpu.memory_space<vmem>>, vector<2x8x256xf32>
    tpu.vector_store %arg7[%c0_22, %c0_23, %c0_24], %34 {strides = array<i32>} : memref<2x8x256xf32, #tpu.memory_space<vmem>>, vector<2x8x256xf32>,
    return
  }
  func.func @transform_0(%arg0: i32) -> (i32, i32) {
    %c0_i32 = arith.constant 0 : i32
    %c0_i32_0 = arith.constant 0 : i32
    %c0_i32_1 = arith.constant 0 : i32
    return %c0_i32, %c0_i32_0 : i32, i32
  }
  func.func @transform_1(%arg0: i32) -> (i32, i32) {
    %c0_i32 = arith.constant 0 : i32
    %c0_i32_0 = arith.constant 0 : i32
    %c0_i32_1 = arith.constant 0 : i32
    return %c0_i32, %c0_i32_0 : i32, i32
  }
  func.func @transform_2(%arg0: i32) -> (i32, i32) {
    %c0_i32 = arith.constant 0 : i32
    %c0_i32_0 = arith.constant 0 : i32
    %c0_i32_1 = arith.constant 0 : i32
    return %c0_i32, %c0_i32_0 : i32, i32
  }
  func.func @transform_3(%arg0: i32) -> (i32, i32) {
    %c0_i32 = arith.constant 0 : i32
    %c0_i32_0 = arith.constant 0 : i32
    %c0_i32_1 = arith.constant 0 : i32
    return %c0_i32, %c0_i32_0 : i32, i32
  }
  func.func @transform_4(%arg0: i32) -> (i32, i32, i32) {
    %c0_i32 = arith.constant 0 : i32
    %c0_i32_0 = arith.constant 0 : i32
    %c0_i32_1 = arith.constant 0 : i32
    return %arg0, %c0_i32, %c0_i32_0 : i32, i32, i32
  }
  func.func @transform_5(%arg0: i32) -> (i32, i32, i32) {
    %c0_i32 = arith.constant 0 : i32
    %c0_i32_0 = arith.constant 0 : i32
    %c0_i32_1 = arith.constant 0 : i32
    return %arg0, %c0_i32, %c0_i32_0 : i32, i32, i32
  }
  func.func @transform_6(%arg0: i32) -> (i32, i32, i32) {
    %c0_i32 = arith.constant 0 : i32
    %c0_i32_0 = arith.constant 0 : i32
    %c0_i32_1 = arith.constant 0 : i32
    return %arg0, %c0_i32, %c0_i32_0 : i32, i32, i32
  }
  func.func @transform_7(%arg0: i32) -> (i32, i32) {
    %c0_i32 = arith.constant 0 : i32
    %c0_i32_0 = arith.constant 0 : i32
    return %arg0, %c0_i32 : i32, i32
  }
}

</mosaic_0001>

<bundles_post_ra>
// kernel: tpu_custom_call.1
= control target key start
LH: loop header
LB: loop body
LE: loop exit
PB: predicated region body
PF: predicated region fallthrough
CT: control target
= control target key end

     0   :  { %13 = vsyncpa [#allocation3], 0  ;;  %s539_s0 = inlined_call_operand.vmem [shape: f32[4,1], index: 0, kind: input, shape index: {}]   ;;  %s540_s1 = inlined_call_operand.vmem [shape: f32[4,1], index: 1, kind: input, shape index: {}]   ;;  %s541_s2 = inlined_call_operand.vmem [shape: f32[12,8], index: 2, kind: input, shape index: {}]   ;;  %s542_s3 = inlined_call_operand.vmem [shape: f32[1,8], index: 3, kind: input, shape index: {}]   ;;  %s543_s4 = inlined_call_operand.hbm [shape: f32[2,4,256], index: 4, kind: input, shape index: {}]   ;;  %s544_s5 = inlined_call_operand.vmem [shape: f32[2,8,256], index: 5, kind: input, shape index: {}]   ;;  %s545_s6 = inlined_call_operand.hbm [shape: f32[2,8,256], index: 6, kind: output, shape index: {0}]   ;;  %s546_s7 = inlined_call_operand.hbm [shape: f32[2,12], index: 7, kind: output, shape index: {1}]  }
   0x1   :  { %14 = vsyncpa [#allocation4], 0 }
   0x2   :  { %15 = vsyncpa [#allocation7], 0  ;;  %s429_s24 = smov [#allocation2]  }
   0x3   :  { %s29_s25 = sshll.u32 %s429_s24, 4  ;;  %s30_s25 = int_to_ptr.vmem [resolvable:$true] %s29_s25 }
   0x4   :  { %s371_s26 = scalar_lea.vmem %s30_s25, 256  ;;  %p376_p1 = scmp.lt.s32.totalorder %s30_s25, %s30_s25 }
   0x5   :  { %p372_p0 = scmp.ne.s32.totalorder %s30_s25, %s371_s26  ;;  %p377_p2 = scmp.lt.s32.totalorder %s371_s26, %s371_s26 }
   0x7   :  { %p378_p3 = por %p377_p2, %p376_p1 }
   0x9   :  { %p379_p4 = pnand %p378_p3, %p372_p0 }
   0xb   :  { %382 = shalt.err (!%p379_p4)
}
   0xc   :  { %s430_s27 = smov 128   ;;  %s431_s28 = smov 8  }
   0xd   :  { %35 = dma.hbm_to_vmem [thread:$0]  %s543_s4, 256, %s30_s25, [#allocation3], %s430_s27, %s430_s27, %s431_s28  }
   0xe   :  { %423 = dma.done.wait [#allocation3], 256  }
   0xf   :  { %424 = vsyncadd [#allocation3], 4294967040  ;;  %v432_v0 = vmov 0   ;;  %v43_v1 = vld [vmem:[%s539_s0] sm:$0xf]  ;;  %v52_v5 = vlaneseq  ;;  %v42_v12 = vld [vmem:[#allocation2 + $0x8] sm:$0xff] }
  0x10   :  { %358 = vset.pattern.permute.xlu0 %v432_v0  ;;  %v44_v2 = vld [vmem:[%s540_s1] sm:$0xf]  ;;  %v433_v3 = vmov 839922192   ;;  %vm81_vm0 = vcmask 1043456   ;;  %v434_v46 = vmov 0.0  }
  0x11   :  { %47 = vperm.xlu0 %358, %v43_v1   ;;  %v50_v4 = vunpack.c.l.s4 %v433_v3  ;;  %v490_v7 = vshrl.u32 %v52_v5, 7  ;;  %v41_v11 = vld [vmem:[#allocation2] sm:$0xff]  ;;  %v192_v45 = vld [vmem:[%s541_s2 + $0x8] sm:$0xf]  ;;  %340 = vmatprep.subr.mxu0 %v434_v46  ;;  %vm435_vm1 = vmmov 0   ;;  %v147_v63 = vand.u32 127, %v52_v5 }
  0x12   :  { %v191_v47 = vld [vmem:[%s541_s2] sm:$0xff]  ;;  %344 = vmatprep.mubr.msk.f32.mxu0 %vm435_vm1, %v434_v46  ;;  %341 = vmatpush3.msk.msra.mxu0 %vm81_vm0, %v192_v45  ;;  %vm156_vm5 = vcmask 1041409   ;;  %vm185_vm7 = vcmask 31744   ;;  %vm187_vm8 = vcmask 64512   ;;  %vm200_vm9 = vcmask 97280   ;;  %s436_s14 = smov [#allocation6]  }
  0x13   :  { %v51_v6 = vunpack.c.0.s8 %v50_v4  ;;  %342 = vmatprep.subr.mxu0 %v434_v46  ;;  %v161_v0 = vadd.s32 4294967292, %v147_v63  ;;  %v174_v4 = vadd.s32 4294967288, %v147_v63  ;;  %vm189_vm10 = vcmask 91136   ;;  %s321_s15 = sshll.u32 %s436_s14, 4  ;;  %s322_s15 = int_to_ptr.vmem [resolvable:$true] %s321_s15 }
  0x14   :  { %343 = vmatpush3.msra.mxu0 %v191_v47  ;;  %s383_s16 = scalar_lea.vmem %s322_s15, 32  ;;  %p388_p6 = scmp.lt.s32.totalorder %s322_s15, %s322_s15 }
  0x15   :  { %61 = vperm.xlu0 %358, %v44_v2   ;;  %v54_v8 = vsub.s32 %v51_v6, %v490_v7  ;;  %v164_v6 = vsub.s32 %v161_v0, %v490_v7  ;;  %p384_p5 = scmp.ne.s32.totalorder %s322_s15, %s383_s16  ;;  %p389_p7 = scmp.lt.s32.totalorder %s383_s16, %s383_s16 }
  0x17   :  { %p390_p8 = por %p389_p7, %p388_p6 }
  0x19   :  { %p391_p9 = pnand %p390_p8, %p384_p5 }
  0x8c   :  { %v48_v9 = vpop.permute.xlu0 %47 }
  0x8d   :  { %v55_v10 = vrot.slane %v48_v9, %v54_v8 }
  0x8f   :  { %v57_v14 = vmul.f32 %v55_v10, %v41_v11  ;;  %v58_v15 = vmul.f32 %v55_v10, %v42_v12 }
  0x90   :  { %v62_v13 = vpop.permute.xlu0 %61 }
  0x91   :  { %v69_v16 = vrot.slane %v62_v13, %v54_v8  ;;  %v150_v8 = vsub.s32 %v147_v63, %v490_v7 }
  0x93   :  { %v71_v17 = vadd.f32 %v69_v16, %v57_v14  ;;  %v72_v18 = vadd.f32 %v69_v16, %v58_v15  ;;  %v177_v15 = vsub.s32 %v174_v4, %v490_v7 }
  0x95   :  { %v73_v19 = vmax.f32 %v71_v17, 0.0  ;;  %v74_v20 = vmax.f32 %v72_v18, 0.0 }
  0x97   :  { %v77_v21 = vcombine.high %v73_v19, %v73_v19  ;;  %v92_v22 = vmul.f32 %v73_v19, %v73_v19  ;;  %v78_v23 = vcombine.high %v74_v20, %v74_v20  ;;  %v93_v24 = vmul.f32 %v74_v20, %v74_v20 }
  0x98   :  { %v82_v25 = vsel %vm81_vm0, %v73_v19, 0.0  ;;  %v87_v34 = vsel %vm81_vm0, %v74_v20, 0.0  ;;  %v110_v40 = vsel %vm81_vm0, %v73_v19, -inf  ;;  %v115_v43 = vsel %vm81_vm0, %v74_v20, -inf }
  0x99   :  { %v83_v26 = vsel %vm81_vm0, %v77_v21, 0.0  ;;  %v96_v27 = vcombine.high %v92_v22, %v92_v22  ;;  %v100_v29 = vsel %vm81_vm0, %v92_v22, 0.0  ;;  %v88_v31 = vsel %vm81_vm0, %v78_v23, 0.0 }
  0x9a   :  { %v84_v28 = vadd.f32 %v83_v26, %v82_v25  ;;  %v97_v32 = vcombine.high %v93_v24, %v93_v24  ;;  %v89_v35 = vadd.f32 %v88_v31, %v87_v34  ;;  %v105_v37 = vsel %vm81_vm0, %v93_v24, 0.0 }
  0x9b   :  { %v101_v30 = vsel %vm81_vm0, %v96_v27, 0.0  ;;  %v111_v39 = vsel %vm81_vm0, %v77_v21, -inf  ;;  %v116_v42 = vsel %vm81_vm0, %v78_v23, -inf  ;;  %v290_v34 = vsub.s32 1, %v490_v7 }
  0x9c   :  { %85 = vadd.xlane.f32.xlu1 %v84_v28  ;;  %v102_v33 = vadd.f32 %v101_v30, %v100_v29  ;;  %v106_v36 = vsel %vm81_vm0, %v97_v32, 0.0  ;;  %v112_v41 = vmax.f32 %v110_v40, %v111_v39  ;;  %v117_v44 = vmax.f32 %v115_v43, %v116_v42  ;;  %v334_v28 = vld [vmem:[%s542_s3] ss:$0 sm:$0xff] }
  0x9d   :  { %v107_v38 = vadd.f32 %v106_v36, %v105_v37  ;;  %v283_v29 = vsub.s32 0, %v490_v7 }
  0x9e   :  { %103 = vadd.xlane.f32.xlu0 %v102_v33 }
  0xa0   :  { %90 = vadd.xlane.f32.xlu1 %v89_v35 }
  0xa4   :  { %108 = vadd.xlane.f32.xlu1 %v107_v38 }
  0xa8   :  { %113 = vmax.xlane.f32.xlu1 %v112_v41 }
  0xac   :  { %118 = vmax.xlane.f32.xlu1 %v117_v44 }
 0x125   :  { %v86_v48 = vpop.xlane.xlu1 %85 }
 0x126   :  { %v120_v49 = vmul.f32 0.00390625, %v86_v48 }
 0x127   :  { %v104_v51 = vpop.xlane.xlu0 %103 }
 0x128   :  { %v122_v50 = vmul.f32 %v120_v49, %v86_v48  ;;  %v151_v19 = vrot.slane %v120_v49, %v150_v8 }
 0x129   :  { %v91_v52 = vpop.xlane.xlu1 %90 }
 0x12a   :  { %v124_v53 = vsub.f32 %v104_v51, %v122_v50  ;;  %v121_v54 = vmul.f32 0.00390625, %v91_v52 }
 0x12c   :  { %v126_v55 = vmax.f32 %v124_v53, 0.0  ;;  %v123_v56 = vmul.f32 %v121_v54, %v91_v52  ;;  %v155_v13 = vrot.slane %v121_v54, %v150_v8 }
 0x12d   :  { %v109_v57 = vpop.xlane.xlu1 %108 }
 0x12e   :  { %v128_v58 = vmul.f32 0.003921569, %v126_v55  ;;  %v125_v59 = vsub.f32 %v109_v57, %v123_v56  ;;  %v157_v24 = vsel %vm156_vm5, %v155_v13, %v151_v19 }
 0x130   :  { %359 = vrsqrt.f32 %v128_v58  ;;  %v127_v60 = vmax.f32 %v125_v59, 0.0  ;;  %vm132_vm2 = vcmp.eq.f32.partialorder %v128_v58, inf  ;;  %v135_v12 = vand.u32 2147483648, %v128_v58 }
 0x131   :  { %v114_v62 = vpop.xlane.xlu1 %113  ;;  %vm134_vm3 = vcmp.eq.f32.partialorder %v128_v58, 0.0 }
 0x132   :  { %v129_v61 = vmul.f32 0.003921569, %v127_v60  ;;  %v165_v5 = vrot.slane %v114_v62, %v164_v6 }
 0x134   :  { %361 = vrsqrt.f32 %v129_v61  ;;  %vm139_vm4 = vcmp.eq.f32.partialorder %v129_v61, inf  ;;  %v142_v17 = vand.u32 2147483648, %v129_v61  ;;  %vm141_vm6 = vcmp.eq.f32.partialorder %v129_v61, 0.0 }
 0x135   :  { %v119_v2 = vpop.xlane.xlu1 %118 }
 0x136   :  { %v169_v11 = vrot.slane %v119_v2, %v164_v6 }
 0x138   :  { %v170_v20 = vsel %vm156_vm5, %v169_v11, %v165_v5 }
 0x139   :  { %v186_v26 = vsel %vm185_vm7, %v157_v24, %v170_v20 }
 0x13d   :  { %v360_v1 = vpop.eup %359 }
 0x13e   :  { %v131_v3 = vmul.f32 %v360_v1, %v128_v58 }
 0x140   :  { %v133_v9 = vsel %vm132_vm2, %v128_v58, %v131_v3 }
 0x141   :  { %v362_v10 = vpop.eup %361  ;;  %v136_v16 = vsel %vm134_vm3, %v135_v12, %v133_v9 }
 0x142   :  { %v138_v14 = vmul.f32 %v362_v10, %v129_v61  ;;  %v178_v22 = vrot.slane %v136_v16, %v177_v15 }
 0x144   :  { %v140_v18 = vsel %vm139_vm4, %v129_v61, %v138_v14 }
 0x145   :  { %v143_v21 = vsel %vm141_vm6, %v142_v17, %v140_v18 }
 0x146   :  { %v182_v23 = vrot.slane %v143_v21, %v177_v15 }
 0x148   :  { %v183_v25 = vsel %vm156_vm5, %v182_v23, %v178_v22 }
 0x149   :  { %v188_v27 = vsel %vm187_vm8, %v186_v26, %v183_v25 }
 0x14a   :  { %345 = vmatmul.mubr.msk.f32.vlgmr.msra.gmra.mxu0 %vm200_vm9, %v188_v27  ;;  %190 = vst.msk [vmem:[#allocation6] sm:$0x3] %vm189_vm10, %v188_v27 }
 0x20a   :  { %v273_v30 = vpop.f32.mrf.mxu0 }
 0x20b   :  { %v274_v31 = vadd.f32 %v334_v28, %v273_v30 }
 0x20c   :  { %v346_v32 = vpop.f32.mrf.mxu0 }
 0x20d   :  { %v284_v33 = vrot.slane %v274_v31, %v283_v29 }
 0x20e   :  { %394 = shalt.err (!%p391_p9)
}
 0x20f   :  { %324 = dma.vmem_to_hbm [thread:$0]  %s322_s15, 32, %s546_s7, [#allocation7]   ;;  %286 = vbcast.lane.b32.xlu1 %v284_v33, 256  ;;  %v291_v35 = vrot.slane %v274_v31, %v290_v34  ;;  %v277_v36 = vld [vmem:[%s544_s5] sm:$0xff]  ;;  %v278_v7 = vld [vmem:[%s544_s5 + $0x8] sm:$0xff]  ;;  %v279_v40 = vld [vmem:[%s544_s5 + $0x10] sm:$0xff] }
 0x210   :  { %v280_v41 = vld [vmem:[%s544_s5 + $0x18] sm:$0xff]  ;;  %s437_s25 = smov [#allocation5]  }
 0x211   :  { %s308_s26 = sshll.u32 %s437_s25, 4  ;;  %s309_s26 = int_to_ptr.vmem [resolvable:$true] %s308_s26 }
 0x212   :  { %s403_s27 = scalar_lea.vmem %s309_s26, 512  ;;  %p408_p11 = scmp.lt.s32.totalorder %s309_s26, %s309_s26 }
 0x213   :  { %293 = vbcast.lane.b32.xlu1 %v291_v35, 256  ;;  %p404_p10 = scmp.ne.s32.totalorder %s309_s26, %s403_s27  ;;  %p409_p12 = scmp.lt.s32.totalorder %s403_s27, %s403_s27 }
 0x215   :  { %p410_p13 = por %p409_p12, %p408_p11 }
 0x217   :  { %p411_p0 = pnand %p410_p13, %p404_p10 }
 0x281   :  { %v287_v37 = vpop.permute.xlu1 %286 }
 0x282   :  { %v295_v38 = vadd.f32 %v287_v37, %v277_v36  ;;  %v296_v39 = vadd.f32 %v287_v37, %v278_v7 }
 0x284   :  { %299 = vst [vmem:[#allocation5] sm:$0xff] %v295_v38  ;;  %300 = vst [vmem:[#allocation5 + $0x8] sm:$0xff] %v296_v39 }
 0x285   :  { %v294_v42 = vpop.permute.xlu1 %293 }
 0x286   :  { %v297_v43 = vadd.f32 %v294_v42, %v279_v40  ;;  %v298_v44 = vadd.f32 %v294_v42, %v280_v41 }
 0x288   :  { %301 = vst [vmem:[#allocation5 + $0x10] sm:$0xff] %v297_v43  ;;  %302 = vst [vmem:[#allocation5 + $0x18] sm:$0xff] %v298_v44 }
 0x289   :  { %414 = shalt.err (!%p411_p0)
}
 0x28a   :  { %s438_s28 = smov 256   ;;  %s439_s29 = smov 16  }
 0x28b   :  { %314 = dma.vmem_to_hbm [thread:$0]  %s309_s26, 512, %s545_s6, [#allocation4], %s438_s28, %s438_s28, %s439_s29  }
 0x28c   :  { %425 = dma.done.wait [#allocation4], 512  }
 0x28d   :  { %426 = vsyncadd [#allocation4], 4294966784 }
 0x28e   :  { %427 = dma.done.wait [#allocation7], 32  }
 0x28f   :  { %428 = vsyncadd [#allocation7], 4294967264 }
 0x290   :  { %331 = vsyncpa [#allocation3], 1 }
 0x291   :  { %332 = vsyncpa [#allocation4], 1 }
 0x292   :  { %333 = vsyncpa [#allocation7], 1 }

</bundles_post_ra>
